<compile_context>
chip_gen: v7x
topology: tpu7x:2x2x1
jax: 0.10.0
libtpu: 0.0.40
codegen_flags: <defaults>
</compile_context>

<pallas_src>
import jax
import jax.numpy as jnp
from jax.experimental import pallas as pl
from jax.experimental.pallas import tpu as pltpu


def _linear_kernel(x_ref, wt_ref, b_ref, o_ref):
    # x_ref : (TM, c_in)       VMEM tile of flattened input rows
    # wt_ref: (c_in, d_model)  VMEM, resident across grid steps
    # b_ref : (1, d_model)     VMEM, resident across grid steps
    # o_ref : (TM, d_model)    VMEM output tile
    acc = jnp.dot(x_ref[...], wt_ref[...], preferred_element_type=jnp.float32)
    o_ref[...] = (acc + b_ref[...].astype(jnp.float32)).astype(o_ref.dtype)


def _round_up(a, b):
    return ((a + b - 1) // b) * b


def geo_positional_embedding(x, weight, bias, *, tile_m=1024):
    """y = x @ weight.T + bias over the last axis of x.

    x:      [..., c_in]
    weight: [d_model, c_in]  (PyTorch nn.Linear convention)
    bias:   [d_model]
    """
    c_in = x.shape[-1]
    d_model = weight.shape[0]
    lead_shape = x.shape[:-1]
    m = 1
    for s in lead_shape:
        m *= s

    x2d = x.reshape(m, c_in)
    wt = weight.T                      # (c_in, d_model), tiny host-side transpose
    b2d = bias.reshape(1, d_model)

    # Row tile: multiple of 8 sublanes; partial last block handled by Pallas
    # masking (no host-side padding or output slicing).
    tm = min(int(tile_m), _round_up(m, 8))
    tm = _round_up(tm, 8)
    grid = (pl.cdiv(m, tm),)

    # VMEM budget: double-buffered x/out tiles (lane-padded to 128) +
    # resident weight/bias + headroom; capped below v7x's 64 MiB physical.
    lane = 128
    d_pad = _round_up(d_model, lane)
    c_pad = max(_round_up(c_in, lane), lane)
    tile_bytes = tm * c_pad * 4 + tm * d_pad * 4
    vmem_bytes = 2 * tile_bytes + c_pad * d_pad * 4 + 8 * d_pad * 4 + (4 << 20)
    vmem_bytes = int(min(vmem_bytes, 48 << 20))

    x_bytes = jnp.dtype(x.dtype).itemsize
    w_bytes = jnp.dtype(weight.dtype).itemsize
    cost = pl.CostEstimate(
        flops=2 * m * c_in * d_model,
        transcendentals=0,
        bytes_accessed=(m * c_in + m * d_model) * x_bytes
        + (c_in * d_model + d_model) * w_bytes,
    )

    out = pl.pallas_call(
        _linear_kernel,
        out_shape=jax.ShapeDtypeStruct((m, d_model), x.dtype),
        grid=grid,
        in_specs=[
            pl.BlockSpec((tm, c_in), lambda i: (i, 0)),
            pl.BlockSpec((c_in, d_model), lambda i: (0, 0)),
            pl.BlockSpec((1, d_model), lambda i: (0, 0)),
        ],
        out_specs=pl.BlockSpec((tm, d_model), lambda i: (i, 0)),
        compiler_params=pltpu.CompilerParams(
            dimension_semantics=("parallel",),
            vmem_limit_bytes=vmem_bytes,
        ),
        cost_estimate=cost,
    )(x2d, wt, b2d)

    return out.reshape(*lead_shape, d_model)


if __name__ == "__main__":
    key = jax.random.PRNGKey(0)
    kx, kw, kb, kx2 = jax.random.split(key, 4)

    # Small shapes consistent with the module's forward:
    #   x: [batch=2, seq=8, c_in=4], d_model=32
    B, L, C_IN, D_MODEL = 2, 8, 4, 32
    x = jax.random.normal(kx, (B, L, C_IN), dtype=jnp.float32)
    bound = 1.0 / (C_IN ** 0.5)
    weight = jax.random.uniform(kw, (D_MODEL, C_IN), jnp.float32, -bound, bound)
    bias = jax.random.uniform(kb, (D_MODEL,), jnp.float32, -bound, bound)

    y = geo_positional_embedding(x, weight, bias)
    y = jax.block_until_ready(y)
    y_ref = x @ weight.T + bias
    assert y.shape == (B, L, D_MODEL)
    assert jnp.allclose(y, y_ref, atol=1e-5, rtol=1e-5)

    # Second check exercising the tiled path with a ragged tail
    # (grid > 1, M not a multiple of the tile) using a small forced tile.
    B2, L2 = 3, 37                      # m = 111 -> grid=(2,), masked tail block
    x2 = jax.random.normal(kx2, (B2, L2, C_IN), dtype=jnp.float32)
    y2 = geo_positional_embedding(x2, weight, bias, tile_m=64)
    y2 = jax.block_until_ready(y2)
    y2_ref = x2 @ weight.T + bias
    assert y2.shape == (B2, L2, D_MODEL)
    assert jnp.allclose(y2, y2_ref, atol=1e-5, rtol=1e-5)

    print("KERNEL_OK")
</pallas_src>

<mosaic_0001>
module attributes {stable_mosaic.version = 11 : i64} {
  func.func @_linear_kernel(%arg0: i32, %arg1: memref<16x4xf32, #tpu.memory_space<vmem>>, %arg2: memref<4x32xf32, #tpu.memory_space<vmem>>, %arg3: memref<1x32xf32, #tpu.memory_space<vmem>>, %arg4: memref<16x32xf32, #tpu.memory_space<vmem>>) attributes {dimension_semantics = [#tpu.dimension_semantics<parallel>], iteration_bounds = array<i64: 1>, scalar_prefetch = 0 : i64, scratch_operands = 0 : i64, tpu.core_type = #tpu.core_type<tc>, window_params = [{transform_indices = @transform_0, window_bounds = array<i64: 16, 4>}, {pipeline_mode = #tpu.pipeline_mode<synchronous>, transform_indices = @transform_1, window_bounds = array<i64: 4, 32>}, {pipeline_mode = #tpu.pipeline_mode<synchronous>, transform_indices = @transform_2, window_bounds = array<i64: 1, 32>}, {transform_indices = @transform_3, window_bounds = array<i64: 16, 32>}]} {
    %c0 = arith.constant 0 : index
    %c0_0 = arith.constant 0 : index
    %0 = vector.load %arg1[%c0, %c0_0] : memref<16x4xf32, #tpu.memory_space<vmem>>, vector<16x4xf32>
    %c0_1 = arith.constant 0 : index
    %c0_2 = arith.constant 0 : index
    %1 = vector.load %arg2[%c0_1, %c0_2] : memref<4x32xf32, #tpu.memory_space<vmem>>, vector<4x32xf32>
    %cst = arith.constant dense<0.000000e+00> : vector<16x32xf32>
    %2 = tpu.matmul %0, %1, %cst {dimension_numbers = #tpu.dot_dimension_numbers<[1], [0], [0], [1], [0, 0, 1, 1], [], []>} : vector<16x4xf32>, vector<4x32xf32>, vector<16x32xf32> -> vector<16x32xf32>
    %c0_3 = arith.constant 0 : index
    %c0_4 = arith.constant 0 : index
    %3 = vector.load %arg3[%c0_3, %c0_4] : memref<1x32xf32, #tpu.memory_space<vmem>>, vector<1x32xf32>
    %4 = vector.broadcast %3 : vector<1x32xf32> to vector<16x32xf32>
    %5 = arith.addf %2, %4 : vector<16x32xf32>
    %c0_5 = arith.constant 0 : index
    %c0_6 = arith.constant 0 : index
    %6 = vector.load %arg4[%c0_5, %c0_6] : memref<16x32xf32, #tpu.memory_space<vmem>>, vector<16x32xf32>
    tpu.vector_store %arg4[%c0_5, %c0_6], %5 {strides = array<i32>} : memref<16x32xf32, #tpu.memory_space<vmem>>, vector<16x32xf32>,
    return
  }
  func.func @transform_0(%arg0: i32) -> (i32, i32) {
    %c0_i32 = arith.constant 0 : i32
    %c0_i32_0 = arith.constant 0 : i32
    return %arg0, %c0_i32 : i32, i32
  }
  func.func @transform_1(%arg0: i32) -> (i32, i32) {
    %c0_i32 = arith.constant 0 : i32
    %c0_i32_0 = arith.constant 0 : i32
    %c0_i32_1 = arith.constant 0 : i32
    return %c0_i32, %c0_i32_0 : i32, i32
  }
  func.func @transform_2(%arg0: i32) -> (i32, i32) {
    %c0_i32 = arith.constant 0 : i32
    %c0_i32_0 = arith.constant 0 : i32
    %c0_i32_1 = arith.constant 0 : i32
    return %c0_i32, %c0_i32_0 : i32, i32
  }
  func.func @transform_3(%arg0: i32) -> (i32, i32) {
    %c0_i32 = arith.constant 0 : i32
    %c0_i32_0 = arith.constant 0 : i32
    return %arg0, %c0_i32 : i32, i32
  }
}

</mosaic_0001>

<bundles_post_ra>
// kernel: tpu_custom_call.1
= control target key start
LH: loop header
LB: loop body
LE: loop exit
PB: predicated region body
PF: predicated region fallthrough
CT: control target
= control target key end

     0   :  { %vm32_vm0 = vcmask 1043456   ;;  %vm25_vm1 = vcmask 31744   ;;  %s216_s0 = inlined_call_operand.vmem [shape: f32[16,4], index: 0, kind: input, shape index: {}]   ;;  %s217_s1 = inlined_call_operand.vmem [shape: f32[4,32], index: 1, kind: input, shape index: {}]   ;;  %s218_s2 = inlined_call_operand.vmem [shape: f32[1,32], index: 2, kind: input, shape index: {}]   ;;  %s219_s3 = inlined_call_operand.hbm [shape: f32[16,32], index: 3, kind: output, shape index: {}]  }
   0x1   :  { %v17_v0 = vld [vmem:[%s217_s1] sm:$0xf]  ;;  %v16_v2 = vld [vmem:[%s216_s0 + $0x8] sm:$0xff] }
   0x2   :  { %v15_v1 = vld [vmem:[%s216_s0] sm:$0xff]  ;;  %137 = vmatprep.subr.msk.mxu0 %vm32_vm0, %v17_v0 }
   0x3   :  { %139 = vmatprep.mubr.msk.f32.mxu0 %vm25_vm1, %v15_v1 }
   0x4   :  { %8 = vsyncpa [#allocation3], 0  ;;  %138 = vmatpush3.msk.msra.mxu0 %vm32_vm0, %v17_v0  ;;  %v130_v3 = vld [vmem:[%s218_s2] ss:$0 sm:$0xff]  ;;  %s169_s1 = smov [#allocation2]   ;;  %vm111_vm2 = vcmask 261120  }
   0x5   :  { %140 = vmatmul.mubr.msk.f32.vlgmr.msra.gmra.mrb[0].mxu0 %vm25_vm1, %v16_v2  ;;  %s119_s20 = sshll.u32 %s169_s1, 4  ;;  %s120_s20 = int_to_ptr.vmem [resolvable:$true] %s119_s20 }
   0x6   :  { %s145_s0 = scalar_lea.vmem %s120_s20, 256  ;;  %p150_p1 = scmp.lt.s32.totalorder %s120_s20, %s120_s20 }
   0x7   :  { %p146_p0 = scmp.ne.s32.totalorder %s120_s20, %s145_s0  ;;  %p151_p2 = scmp.lt.s32.totalorder %s145_s0, %s145_s0 }
   0x9   :  { %p152_p3 = por %p151_p2, %p150_p1 }
   0xb   :  { %p153_p4 = pnand %p152_p3, %p146_p0 }
  0xd8   :  { %v141_v4 = vpop.f32.mrb[0].mxu0 }
  0xd9   :  { %v108_v5 = vadd.f32 %v141_v4, %v130_v3  ;;  %v102_v6 = vpop.f32.mrb[1].mxu0 }
  0xda   :  { %v103_v7 = vadd.f32 %v130_v3, %v102_v6 }
  0xdb   :  { %113 = vst.msk [vmem:[#allocation2 + $0x8] sm:$0xff] %vm111_vm2, %v108_v5 }
  0xdc   :  { %112 = vst.msk [vmem:[#allocation2] sm:$0xff] %vm111_vm2, %v103_v7 }
  0xdd   :  { %156 = shalt.err (!%p153_p4)
}
  0xde   :  { %s157_s2 = scalar_lea.hbm %s219_s3, 256 }
  0xdf   :  { %p158_p5 = scmp.ne.s32.totalorder %s219_s3, %s157_s2  ;;  %p161_p6 = scmp.lt.u32.totalorder %s157_s2, %s219_s3 }
  0xe1   :  { %p163_p7 = pnand %p161_p6, %p158_p5 }
  0xe3   :  { %166 = shalt.err (!%p163_p7)
}
  0xe4   :  { %s170_s27 = smov 128   ;;  %s171_s28 = smov 8  }
  0xe5   :  { %125 = dma.vmem_to_hbm [thread:$0]  %s120_s20, 256, %s219_s3, [#allocation3], %s170_s27, %s170_s27, %s171_s28  }
  0xe6   :  { %167 = dma.done.wait [#allocation3], 256  }
  0xe7   :  { %168 = vsyncadd [#allocation3], 4294967040 }
  0xe8   :  { %129 = vsyncpa [#allocation3], 1 }

</bundles_post_ra>
